<compile_context>
chip_gen: v7x
topology: tpu7x:2x2x1
jax: 0.10.0
libtpu: 0.0.40
codegen_flags: <defaults>
</compile_context>

<pallas_src>
import math
import numpy as np
import jax
import jax.numpy as jnp
from jax.experimental import pallas as pl
from jax.experimental.pallas import tpu as pltpu


# ----------------------------------------------------------------------------
# Deterministic parameter setup (mirrors gaussian() / create_window()).
# ----------------------------------------------------------------------------
def _gaussian_1d(window_size: int, sigma: float) -> np.ndarray:
    xs = np.arange(window_size, dtype=np.float64)
    g = np.exp(-((xs - window_size // 2) ** 2) / (2.0 * sigma ** 2))
    return (g / g.sum()).astype(np.float32)


def _band_matrix(n: int, g: np.ndarray) -> np.ndarray:
    """M[r, c] = g[c - r + p] if |c - r| <= p else 0 (zero-padded 1-D conv)."""
    ws = int(g.shape[0])
    p = ws // 2
    r = np.arange(n)[:, None]
    c = np.arange(n)[None, :]
    d = c - r
    idx = np.clip(d + p, 0, ws - 1)
    return np.where(np.abs(d) <= p, g[idx], 0.0).astype(np.float32)


def _vmem_capacity_bytes() -> int:
    cap = 64 * 1024 * 1024          # conservative default (v7x per-core VMEM)
    try:
        info = pltpu.get_tpu_info()
        cap = int(getattr(info, "vmem_capacity_bytes", cap)) or cap
    except Exception:
        pass
    return cap


def _pick_bm(nc: int, h: int, w: int, vmem_cap: int) -> int:
    """Images per grid step.

    Goals (per perf review): block lane width bm*w is a multiple of 128
    (lane-dense vregs, clean BlockSpec), ~512 lanes per block so the MXU /
    VPU / DMA are well fed, the (bm*w)^2 row band and ~32 live (h, bm*w)
    f32 maps stay inside a fraction of per-generation VMEM, and the grid has
    >= 2 steps when the batch allows it (v7x megacore).
    """
    align = (w * 128) // math.gcd(w, 128) // w        # images per 128-lane unit
    budget = max(vmem_cap // 4, 8 * 1024 * 1024)
    lanes_cap_band = 1024                             # (bm*w)^2 * 4 <= 4 MiB
    lanes_cap_maps = max(128, budget // (32 * h * 4))
    k = max(1, min(512, lanes_cap_band, lanes_cap_maps) // (align * w))
    bm = align * k
    while bm > align and -(-nc // bm) < 2:            # prefer grid >= 2
        bm -= align
    return bm


# ----------------------------------------------------------------------------
# Pallas kernel: 2 batched Toeplitz matmuls (MXU) + lane-dense SSIM epilogue.
# ----------------------------------------------------------------------------
def _make_ssim_kernel(bm: int, h: int, w: int, nc_valid: int, masked: bool):
    C1 = 0.01 ** 2
    C2 = 0.03 ** 2
    lanes = bm * w

    def kernel(a_ref, b_ref, a5_ref, bbd_ref, o_ref):
        x = a_ref[...].astype(jnp.float32)            # (h, bm*w), lane-dense
        y = b_ref[...].astype(jnp.float32)

        # Five conv inputs stacked along sublanes -> ONE column-conv matmul
        # (block-diag band over the 5 stats) and ONE row-conv matmul
        # (block-diag band over the bm lane-packed images).
        z = jnp.concatenate([x, y, x * x, y * y, x * y], axis=0)   # (5h, lanes)
        t = jnp.dot(a5_ref[...], z, preferred_element_type=jnp.float32)
        u = jnp.dot(t, bbd_ref[...], preferred_element_type=jnp.float32)

        mu1 = u[0 * h:1 * h]
        mu2 = u[1 * h:2 * h]
        e11 = u[2 * h:3 * h]
        e22 = u[3 * h:4 * h]
        e12 = u[4 * h:5 * h]

        mu1_sq = mu1 * mu1
        mu2_sq = mu2 * mu2
        mu1_mu2 = mu1 * mu2
        sigma1_sq = e11 - mu1_sq
        sigma2_sq = e22 - mu2_sq
        sigma12 = e12 - mu1_mu2
        num = (2.0 * mu1_mu2 + C1) * (2.0 * sigma12 + C2)
        den = (mu1_sq + mu2_sq + C1) * (sigma1_sq + sigma2_sq + C2)
        # EUP reciprocal keeps the divide off the (binding) VALU slot.
        ssim_map = num * pl.reciprocal(den, approx=True)

        if masked:
            # Zero-padded images were appended so NC divides bm; mask them so
            # the final mean is exact (a zero image would contribute SSIM=1).
            lane = jax.lax.broadcasted_iota(jnp.int32, (h, lanes), 1)
            img = pl.program_id(0) * bm + lane // w
            ssim_map = jnp.where(img < nc_valid, ssim_map, 0.0)

        block_sum = jnp.sum(ssim_map)                 # one XLU reduction/step
        # Lane-dense unmasked store; wrapper reads element [:, 0, 0].
        o_ref[...] = jnp.broadcast_to(block_sum, o_ref.shape).astype(jnp.float32)

    return kernel


def ssim_metric(img1, img2, window_size: int = 11, size_average: bool = True):
    """SSIM of two NCHW batches; returns a scalar (matches SSIMMetric.forward)."""
    # TODO(synk): only size_average=True (the module's default) is implemented.
    assert size_average, "only size_average=True is implemented"
    N, C, H, W = img1.shape
    NC = N * C

    vmem_cap = _vmem_capacity_bytes()
    bm = _pick_bm(NC, H, W, vmem_cap)
    nc_pad = -(-NC // bm) * bm
    grid = nc_pad // bm

    def to_lane_packed(img):
        z = img.reshape(NC, H, W)
        if nc_pad != NC:
            z = jnp.pad(z, ((0, nc_pad - NC), (0, 0), (0, 0)))
        # (nc, H, W) -> (H, nc*W): all images side by side along lanes.
        return jnp.transpose(z, (1, 0, 2)).reshape(H, nc_pad * W)

    a = to_lane_packed(img1)                          # keep HBM dtype
    b = to_lane_packed(img2)

    g = _gaussian_1d(window_size, 1.5)
    col_band = _band_matrix(H, g)                     # (H, H): out = A @ z
    row_band = _band_matrix(W, g).T                   # (W, W): out = z @ B
    a5 = jnp.asarray(np.kron(np.eye(5, dtype=np.float32), col_band))
    b_bd = jnp.asarray(np.kron(np.eye(bm, dtype=np.float32), row_band))

    kernel = _make_ssim_kernel(bm, H, W, NC, masked=(nc_pad != NC))

    partial = pl.pallas_call(
        kernel,
        out_shape=jax.ShapeDtypeStruct((grid, 8, 128), jnp.float32),
        grid_spec=pltpu.PrefetchScalarGridSpec(
            num_scalar_prefetch=0,
            grid=(grid,),
            in_specs=[
                pl.BlockSpec((H, bm * W), lambda i: (0, i)),
                pl.BlockSpec((H, bm * W), lambda i: (0, i)),
                # Constant index maps: Pallas only re-fetches when the block
                # index changes, so the band matrices are DMA'd once.
                pl.BlockSpec((5 * H, 5 * H), lambda i: (0, 0)),
                pl.BlockSpec((bm * W, bm * W), lambda i: (0, 0)),
            ],
            out_specs=pl.BlockSpec((1, 8, 128), lambda i: (i, 0, 0)),
        ),
        compiler_params=pltpu.CompilerParams(
            dimension_semantics=("parallel",),
            vmem_limit_bytes=max(
                32 * 1024 * 1024,
                min(int(vmem_cap * 3 // 4), 112 * 1024 * 1024)),
        ),
    )(a, b, a5, b_bd)

    # size_average=True -> global mean over (N, C, H, W).
    return jnp.sum(partial[:, 0, 0]) / (NC * H * W)


# ----------------------------------------------------------------------------
# Pure numpy reference (same math as torch _ssim with zero-padded conv).
# ----------------------------------------------------------------------------
def _ssim_reference_numpy(img1, img2, window_size=11):
    img1 = np.asarray(img1, dtype=np.float32)
    img2 = np.asarray(img2, dtype=np.float32)
    N, C, H, W = img1.shape
    p = window_size // 2
    g = _gaussian_1d(window_size, 1.5)
    w2d = np.outer(g, g).astype(np.float32)
    a = np.pad(img1.reshape(N * C, H, W), ((0, 0), (p, p), (p, p)))
    b = np.pad(img2.reshape(N * C, H, W), ((0, 0), (p, p), (p, p)))
    mu1 = np.zeros((N * C, H, W), np.float32)
    mu2 = np.zeros_like(mu1)
    s11 = np.zeros_like(mu1)
    s22 = np.zeros_like(mu1)
    s12 = np.zeros_like(mu1)
    for i in range(window_size):
        for j in range(window_size):
            w = w2d[i, j]
            av = a[:, i:i + H, j:j + W]
            bv = b[:, i:i + H, j:j + W]
            mu1 += w * av
            mu2 += w * bv
            s11 += w * av * av
            s22 += w * bv * bv
            s12 += w * av * bv
    C1, C2 = 0.01 ** 2, 0.03 ** 2
    mu1_sq, mu2_sq, mu1_mu2 = mu1 * mu1, mu2 * mu2, mu1 * mu2
    sig1, sig2, sig12 = s11 - mu1_sq, s22 - mu2_sq, s12 - mu1_mu2
    m = ((2 * mu1_mu2 + C1) * (2 * sig12 + C2)) / (
        (mu1_sq + mu2_sq + C1) * (sig1 + sig2 + C2))
    return float(m.mean())


if __name__ == "__main__":
    key = jax.random.PRNGKey(0)
    k1, k2 = jax.random.split(key)
    img1 = jax.random.uniform(k1, (2, 4, 16, 16), dtype=jnp.float32)
    img2 = jax.random.uniform(k2, (2, 4, 16, 16), dtype=jnp.float32)

    val = ssim_metric(img1, img2)
    val = jax.block_until_ready(val)

    ref = _ssim_reference_numpy(np.array(img1), np.array(img2))
    assert abs(float(val) - ref) < 1e-3, (float(val), ref)

    print("KERNEL_OK")
</pallas_src>

<mosaic_0001>
module attributes {stable_mosaic.version = 11 : i64} {
  func.func @kernel(%arg0: i32, %arg1: memref<16x128xf32, #tpu.memory_space<vmem>>, %arg2: memref<16x128xf32, #tpu.memory_space<vmem>>, %arg3: memref<80x80xf32, #tpu.memory_space<vmem>>, %arg4: memref<128x128xf32, #tpu.memory_space<vmem>>, %arg5: memref<1x8x128xf32, #tpu.memory_space<vmem>>) attributes {dimension_semantics = [#tpu.dimension_semantics<parallel>], iteration_bounds = array<i64: 1>, scalar_prefetch = 0 : i64, scratch_operands = 0 : i64, tpu.core_type = #tpu.core_type<tc>, window_params = [{transform_indices = @transform_0, window_bounds = array<i64: 16, 128>}, {transform_indices = @transform_1, window_bounds = array<i64: 16, 128>}, {pipeline_mode = #tpu.pipeline_mode<synchronous>, transform_indices = @transform_2, window_bounds = array<i64: 80, 80>}, {pipeline_mode = #tpu.pipeline_mode<synchronous>, transform_indices = @transform_3, window_bounds = array<i64: 128, 128>}, {transform_indices = @transform_4, window_bounds = array<i64: 1, 8, 128>}]} {
    %c0 = arith.constant 0 : index
    %c0_0 = arith.constant 0 : index
    %0 = vector.load %arg1[%c0, %c0_0] : memref<16x128xf32, #tpu.memory_space<vmem>>, vector<16x128xf32>
    %c0_1 = arith.constant 0 : index
    %c0_2 = arith.constant 0 : index
    %1 = vector.load %arg2[%c0_1, %c0_2] : memref<16x128xf32, #tpu.memory_space<vmem>>, vector<16x128xf32>
    %2 = arith.mulf %0, %0 : vector<16x128xf32>
    %3 = arith.mulf %1, %1 : vector<16x128xf32>
    %4 = arith.mulf %0, %1 : vector<16x128xf32>
    %5 = tpu.concatenate %0, %1, %2, %3, %4 in 0 : vector<16x128xf32>, vector<16x128xf32>, vector<16x128xf32>, vector<16x128xf32>, vector<16x128xf32> -> vector<80x128xf32>
    %c0_3 = arith.constant 0 : index
    %c0_4 = arith.constant 0 : index
    %6 = vector.load %arg3[%c0_3, %c0_4] : memref<80x80xf32, #tpu.memory_space<vmem>>, vector<80x80xf32>
    %cst = arith.constant dense<0.000000e+00> : vector<80x128xf32>
    %7 = tpu.matmul %6, %5, %cst {dimension_numbers = #tpu.dot_dimension_numbers<[1], [0], [0], [1], [0, 0, 1, 1], [], []>} : vector<80x80xf32>, vector<80x128xf32>, vector<80x128xf32> -> vector<80x128xf32>
    %c0_5 = arith.constant 0 : index
    %c0_6 = arith.constant 0 : index
    %8 = vector.load %arg4[%c0_5, %c0_6] : memref<128x128xf32, #tpu.memory_space<vmem>>, vector<128x128xf32>
    %cst_7 = arith.constant dense<0.000000e+00> : vector<80x128xf32>
    %9 = tpu.matmul %7, %8, %cst_7 {dimension_numbers = #tpu.dot_dimension_numbers<[1], [0], [0], [1], [0, 0, 1, 1], [], []>} : vector<80x128xf32>, vector<128x128xf32>, vector<80x128xf32> -> vector<80x128xf32>
    %10 = vector.extract_strided_slice %9 {offsets = [0, 0], sizes = [16, 128], strides = [1, 1]} : vector<80x128xf32> to vector<16x128xf32>
    %11 = vector.extract_strided_slice %9 {offsets = [16, 0], sizes = [16, 128], strides = [1, 1]} : vector<80x128xf32> to vector<16x128xf32>
    %12 = vector.extract_strided_slice %9 {offsets = [32, 0], sizes = [16, 128], strides = [1, 1]} : vector<80x128xf32> to vector<16x128xf32>
    %13 = vector.extract_strided_slice %9 {offsets = [48, 0], sizes = [16, 128], strides = [1, 1]} : vector<80x128xf32> to vector<16x128xf32>
    %14 = vector.extract_strided_slice %9 {offsets = [64, 0], sizes = [16, 128], strides = [1, 1]} : vector<80x128xf32> to vector<16x128xf32>
    %15 = arith.mulf %10, %10 : vector<16x128xf32>
    %16 = arith.mulf %11, %11 : vector<16x128xf32>
    %17 = arith.mulf %10, %11 : vector<16x128xf32>
    %18 = arith.subf %12, %15 : vector<16x128xf32>
    %19 = arith.subf %13, %16 : vector<16x128xf32>
    %20 = arith.subf %14, %17 : vector<16x128xf32>
    %cst_8 = arith.constant 2.000000e+00 : f32
    %21 = vector.broadcast %cst_8 : f32 to vector<16x128xf32>
    %22 = arith.mulf %21, %17 : vector<16x128xf32>
    %cst_9 = arith.constant 9.99999974E-5 : f32
    %23 = vector.broadcast %cst_9 : f32 to vector<16x128xf32>
    %24 = arith.addf %22, %23 : vector<16x128xf32>
    %cst_10 = arith.constant 2.000000e+00 : f32
    %25 = vector.broadcast %cst_10 : f32 to vector<16x128xf32>
    %26 = arith.mulf %25, %20 : vector<16x128xf32>
    %cst_11 = arith.constant 8.99999984E-4 : f32
    %27 = vector.broadcast %cst_11 : f32 to vector<16x128xf32>
    %28 = arith.addf %26, %27 : vector<16x128xf32>
    %29 = arith.mulf %24, %28 : vector<16x128xf32>
    %30 = arith.addf %15, %16 : vector<16x128xf32>
    %cst_12 = arith.constant 9.99999974E-5 : f32
    %31 = vector.broadcast %cst_12 : f32 to vector<16x128xf32>
    %32 = arith.addf %30, %31 : vector<16x128xf32>
    %33 = arith.addf %18, %19 : vector<16x128xf32>
    %cst_13 = arith.constant 8.99999984E-4 : f32
    %34 = vector.broadcast %cst_13 : f32 to vector<16x128xf32>
    %35 = arith.addf %33, %34 : vector<16x128xf32>
    %36 = arith.mulf %32, %35 : vector<16x128xf32>
    %37 = tpu.reciprocal %36 {approx = true} : vector<16x128xf32> -> vector<16x128xf32>
    %38 = arith.mulf %29, %37 : vector<16x128xf32>
    %39 = vector.shape_cast %38 : vector<16x128xf32> to vector<1x16x128xf32>
    %cst_14 = arith.constant dense<0.000000e+00> : vector<1xf32>
    %40 = vector.multi_reduction <add>, %39, %cst_14 [1, 2] : vector<1x16x128xf32> to vector<1xf32>
    %41 = vector.shape_cast %40 : vector<1xf32> to vector<1x1x1xf32>
    %42 = vector.extract %41[0, 0, 0] : f32 from vector<1x1x1xf32>
    %43 = vector.broadcast %42 : f32 to vector<1x8x128xf32>
    %c0_15 = arith.constant 0 : index
    %c0_16 = arith.constant 0 : index
    %c0_17 = arith.constant 0 : index
    %44 = vector.load %arg5[%c0_15, %c0_16, %c0_17] : memref<1x8x128xf32, #tpu.memory_space<vmem>>, vector<1x8x128xf32>
    tpu.vector_store %arg5[%c0_15, %c0_16, %c0_17], %43 {strides = array<i32>} : memref<1x8x128xf32, #tpu.memory_space<vmem>>, vector<1x8x128xf32>,
    return
  }
  func.func @transform_0(%arg0: i32) -> (i32, i32) {
    %c0_i32 = arith.constant 0 : i32
    %c0_i32_0 = arith.constant 0 : i32
    return %c0_i32, %arg0 : i32, i32
  }
  func.func @transform_1(%arg0: i32) -> (i32, i32) {
    %c0_i32 = arith.constant 0 : i32
    %c0_i32_0 = arith.constant 0 : i32
    return %c0_i32, %arg0 : i32, i32
  }
  func.func @transform_2(%arg0: i32) -> (i32, i32) {
    %c0_i32 = arith.constant 0 : i32
    %c0_i32_0 = arith.constant 0 : i32
    %c0_i32_1 = arith.constant 0 : i32
    return %c0_i32, %c0_i32_0 : i32, i32
  }
  func.func @transform_3(%arg0: i32) -> (i32, i32) {
    %c0_i32 = arith.constant 0 : i32
    %c0_i32_0 = arith.constant 0 : i32
    %c0_i32_1 = arith.constant 0 : i32
    return %c0_i32, %c0_i32_0 : i32, i32
  }
  func.func @transform_4(%arg0: i32) -> (i32, i32, i32) {
    %c0_i32 = arith.constant 0 : i32
    %c0_i32_0 = arith.constant 0 : i32
    %c0_i32_1 = arith.constant 0 : i32
    return %arg0, %c0_i32, %c0_i32_0 : i32, i32, i32
  }
}

</mosaic_0001>

<bundles_post_ra>
// kernel: tpu_custom_call.1
= control target key start
LH: loop header
LB: loop body
LE: loop exit
PB: predicated region body
PF: predicated region fallthrough
CT: control target
= control target key end

     0   :  { %9 = vsyncpa [#allocation3], 0  ;;  %s884_s0 = inlined_call_operand.hbm [shape: f32[16,128], index: 0, kind: input, shape index: {}]   ;;  %s885_s1 = inlined_call_operand.hbm [shape: f32[16,128], index: 1, kind: input, shape index: {}]   ;;  %s886_s2 = inlined_call_operand.hbm [shape: f32[80,80], index: 2, kind: input, shape index: {}]   ;;  %s887_s3 = inlined_call_operand.hbm [shape: f32[128,128], index: 3, kind: input, shape index: {}]   ;;  %s888_s4 = inlined_call_operand.hbm [shape: f32[1,8,128], index: 4, kind: output, shape index: {}]  }
   0x1   :  { %10 = vsyncpa [#allocation6], 0 }
   0x2   :  { %11 = vsyncpa [#allocation9], 0 }
   0x3   :  { %12 = vsyncpa [#allocation4], 0  ;;  %s756_s15 = smov [#allocation5]   ;;  %s757_s17 = smov [#allocation2]  }
   0x4   :  { %s30_s16 = sshll.u32 %s756_s15, 4  ;;  %s18_s18 = sshll.u32 %s757_s17, 4  ;;  %s31_s16 = int_to_ptr.vmem [resolvable:$true] %s30_s16  ;;  %s788_s18 = int_to_ptr.vmem [resolvable:$true] %s18_s18 }
   0x5   :  { %s638_s21 = scalar_lea.hbm %s885_s1, 256 }
   0x6   :  { %p639_p0 = scmp.ne.s32.totalorder %s885_s1, %s638_s21  ;;  %p642_p1 = scmp.lt.u32.totalorder %s638_s21, %s885_s1 }
   0x8   :  { %p644_p2 = pnand %p642_p1, %p639_p0 }
   0xa   :  { %647 = shalt.err (!%p644_p2)
}
   0xb   :  { %s648_s26 = scalar_lea.vmem %s31_s16, 256  ;;  %p653_p4 = scmp.lt.s32.totalorder %s31_s16, %s31_s16 }
   0xc   :  { %p649_p3 = scmp.ne.s32.totalorder %s31_s16, %s648_s26  ;;  %p654_p5 = scmp.lt.s32.totalorder %s648_s26, %s648_s26 }
   0xe   :  { %p655_p6 = por %p654_p5, %p653_p4 }
  0x10   :  { %p656_p7 = pnand %p655_p6, %p649_p3 }
  0x12   :  { %659 = shalt.err (!%p656_p7)
}
  0x13   :  { %s758_s27 = smov 128   ;;  %s759_s28 = smov 8  }
  0x14   :  { %36 = dma.hbm_to_vmem [thread:$0]  %s885_s1, 256, %s31_s16, [#allocation6], %s758_s27, %s758_s27, %s759_s28  }
  0x15   :  { %s660_s7 = scalar_lea.hbm %s884_s0, 256 }
  0x16   :  { %p661_p8 = scmp.ne.s32.totalorder %s884_s0, %s660_s7  ;;  %p664_p9 = scmp.lt.u32.totalorder %s660_s7, %s884_s0 }
  0x18   :  { %p666_p10 = pnand %p664_p9, %p661_p8 }
  0x1a   :  { %669 = shalt.err (!%p666_p10)
}
  0x1b   :  { %s670_s12 = scalar_lea.vmem %s788_s18, 256  ;;  %p675_p12 = scmp.lt.s32.totalorder %s788_s18, %s788_s18 }
  0x1c   :  { %p671_p11 = scmp.ne.s32.totalorder %s788_s18, %s670_s12  ;;  %p676_p13 = scmp.lt.s32.totalorder %s670_s12, %s670_s12 }
  0x1e   :  { %p677_p0 = por %p676_p13, %p675_p12 }
  0x20   :  { %p678_p1 = pnand %p677_p0, %p671_p11 }
  0x22   :  { %681 = shalt.err (!%p678_p1)
}
  0x23   :  { %24 = dma.hbm_to_vmem [thread:$0]  %s884_s0, 256, %s788_s18, [#allocation3], %s758_s27, %s758_s27, %s759_s28  }
  0x24   :  { %s760_s14 = smov [#allocation7]   ;;  %s761_s16 = smov [#allocation8]  }
  0x25   :  { %s42_s15 = sshll.u32 %s760_s14, 4  ;;  %s54_s17 = sshll.u32 %s761_s16, 4  ;;  %s43_s15 = int_to_ptr.vmem [resolvable:$true] %s42_s15  ;;  %s825_s17 = int_to_ptr.vmem [resolvable:$true] %s54_s17 }
  0x26   :  { %s682_s21 = scalar_lea.hbm %s886_s2, 1280 }
  0x27   :  { %p683_p2 = scmp.ne.s32.totalorder %s886_s2, %s682_s21  ;;  %p686_p3 = scmp.lt.u32.totalorder %s682_s21, %s886_s2 }
  0x29   :  { %p688_p4 = pnand %p686_p3, %p683_p2 }
  0x2b   :  { %691 = shalt.err (!%p688_p4)
}
  0x2c   :  { %s692_s0 = scalar_lea.vmem %s43_s15, 1280  ;;  %p697_p6 = scmp.lt.s32.totalorder %s43_s15, %s43_s15 }
  0x2d   :  { %p693_p5 = scmp.ne.s32.totalorder %s43_s15, %s692_s0  ;;  %p698_p7 = scmp.lt.s32.totalorder %s692_s0, %s692_s0 }
  0x2f   :  { %p699_p8 = por %p698_p7, %p697_p6 }
  0x31   :  { %p700_p9 = pnand %p699_p8, %p693_p5 }
  0x33   :  { %703 = shalt.err (!%p700_p9)
}
  0x34   :  { %48 = dma.hbm_to_vmem [thread:$0]  %s886_s2, 1280, %s43_s15, [#allocation6], %s758_s27, %s758_s27, %s759_s28  }
  0x35   :  { %s704_s5 = scalar_lea.hbm %s887_s3, 2048 }
  0x36   :  { %p705_p10 = scmp.ne.s32.totalorder %s887_s3, %s704_s5  ;;  %p708_p11 = scmp.lt.u32.totalorder %s704_s5, %s887_s3 }
  0x38   :  { %p710_p12 = pnand %p708_p11, %p705_p10 }
  0x3a   :  { %713 = shalt.err (!%p710_p12)
}
  0x3b   :  { %s714_s10 = scalar_lea.vmem %s825_s17, 2048  ;;  %p719_p0 = scmp.lt.s32.totalorder %s825_s17, %s825_s17 }
  0x3c   :  { %p715_p13 = scmp.ne.s32.totalorder %s825_s17, %s714_s10  ;;  %p720_p1 = scmp.lt.s32.totalorder %s714_s10, %s714_s10 }
  0x3e   :  { %p721_p2 = por %p720_p1, %p719_p0 }
  0x40   :  { %p722_p3 = pnand %p721_p2, %p715_p13 }
  0x42   :  { %725 = shalt.err (!%p722_p3)
}
  0x43   :  { %60 = dma.hbm_to_vmem [thread:$0]  %s887_s3, 2048, %s825_s17, [#allocation9], %s758_s27, %s758_s27, %s759_s28  }
  0x44   :  { %748 = dma.done.wait [#allocation3], 256  }
  0x45   :  { %749 = vsyncadd [#allocation3], 4294967040 }
  0x46   :  { %750 = dma.done.wait [#allocation6], 1536  }
  0x47   :  { %751 = vsyncadd [#allocation6], 4294965760 }
  0x48   :  { %752 = dma.done.wait [#allocation9], 2048  }
  0x49   :  { %753 = vsyncadd [#allocation9], 4294965248  ;;  %vm93_vm0 = vcmask 654336   ;;  %v73_v0 = vld [vmem:[#allocation2] sm:$0xff]  ;;  %v74_v1 = vld [vmem:[#allocation2 + $0x8] sm:$0xff]  ;;  %s762_s3 = smov [#allocation10]  }
  0x4a   :  { %v75_v2 = vld [vmem:[#allocation5] sm:$0xff]  ;;  %v573_v3 = vpack.c.bf16 %v74_v1, %v73_v0  ;;  %v76_v4 = vld [vmem:[#allocation5 + $0x8] sm:$0xff]  ;;  %v77_v5 = vmul.f32 %v73_v0, %v73_v0  ;;  %v78_v6 = vmul.f32 %v74_v1, %v74_v1  ;;  %v83_v7 = vld [vmem:[#allocation7] sm:$0xff]  ;;  %s424_s27 = sshll.u32 %s762_s3, 4  ;;  %s425_s27 = int_to_ptr.vmem [resolvable:$true] %s424_s27 }
  0x4b   :  { %v577_v8 = vpack.c.bf16 %v76_v4, %v75_v2  ;;  %511 = vmatprep.mubr.msk.f32.mxu0 %vm93_vm0, %v83_v7  ;;  %v239_v9 = vld [vmem:[#allocation8] sm:$0xff]  ;;  %v79_v11 = vmul.f32 %v75_v2, %v75_v2  ;;  %v80_v12 = vmul.f32 %v76_v4, %v76_v4  ;;  %v240_v13 = vld [vmem:[#allocation8 + $0x8] sm:$0xff]  ;;  %v241_v14 = vld [vmem:[#allocation8 + $0x10] sm:$0xff]  ;;  %v81_v21 = vmul.f32 %v75_v2, %v73_v0  ;;  %s726_s12 = scalar_lea.vmem %s425_s27, 128  ;;  %p731_p5 = scmp.lt.s32.totalorder %s425_s27, %s425_s27 }
  0x4c   :  { %574 = vmatprep.subr.bf16.mxu0 %v573_v3  ;;  %v581_v10 = vpack.c.bf16 %v78_v6, %v77_v5  ;;  %v242_v15 = vld [vmem:[#allocation8 + $0x18] sm:$0xff]  ;;  %v593_v16 = vpack.c.bf16 %v240_v13, %v239_v9  ;;  %v243_v18 = vld [vmem:[#allocation8 + $0x20] sm:$0xff]  ;;  %v244_v19 = vld [vmem:[#allocation8 + $0x28] sm:$0xff]  ;;  %v82_v22 = vmul.f32 %v76_v4, %v74_v1  ;;  %p727_p4 = scmp.ne.s32.totalorder %s425_s27, %s726_s12  ;;  %p732_p6 = scmp.lt.s32.totalorder %s726_s12, %s726_s12 }
  0x4d   :  { %576 = vmatpush3.bf16.msra.mxu0 %v573_v3  ;;  %v597_v17 = vpack.c.bf16 %v242_v15, %v241_v14  ;;  %v585_v20 = vpack.c.bf16 %v80_v12, %v79_v11  ;;  %v601_v23 = vpack.c.bf16 %v244_v19, %v243_v18  ;;  %v245_v24 = vld [vmem:[#allocation8 + $0x30] sm:$0xff]  ;;  %v246_v25 = vld [vmem:[#allocation8 + $0x38] sm:$0xff]  ;;  %v247_v28 = vld [vmem:[#allocation8 + $0x40] sm:$0xff] }
  0x4e   :  { %578 = vmatprep.subr.bf16.mxu0 %v577_v8  ;;  %594 = vmatprep.subr.bf16.mxu1 %v593_v16  ;;  %v589_v26 = vpack.c.bf16 %v82_v22, %v81_v21  ;;  %v605_v27 = vpack.c.bf16 %v246_v25, %v245_v24  ;;  %v248_v29 = vld [vmem:[#allocation8 + $0x48] sm:$0xff]  ;;  %v249_v31 = vld [vmem:[#allocation8 + $0x50] sm:$0xff]  ;;  %v250_v32 = vld [vmem:[#allocation8 + $0x58] sm:$0xff]  ;;  %p733_p7 = por %p732_p6, %p731_p5 }
  0x4f   :  { %596 = vmatpush3.bf16.msra.mxu1 %v593_v16  ;;  %v609_v30 = vpack.c.bf16 %v248_v29, %v247_v28  ;;  %v84_v33 = vld [vmem:[#allocation7 + $0x8] sm:$0xff]  ;;  %v85_v34 = vld [vmem:[#allocation7 + $0x10] sm:$0xff]  ;;  %v613_v35 = vpack.c.bf16 %v250_v32, %v249_v31  ;;  %v252_v37 = vld [vmem:[#allocation8 + $0x68] sm:$0xff] }
  0x50   :  { %598 = vmatprep.subr.bf16.mxu1 %v597_v17  ;;  %v251_v36 = vld [vmem:[#allocation8 + $0x60] sm:$0xff]  ;;  %v86_v38 = vld [vmem:[#allocation7 + $0x18] sm:$0xff]  ;;  %v87_v39 = vld [vmem:[#allocation7 + $0x20] sm:$0xff]  ;;  %p734_p8 = pnand %p733_p7, %p727_p4 }
  0x51   :  { %580 = vmatpush3.bf16.msra.mxu0 %v577_v8  ;;  %v617_v40 = vpack.c.bf16 %v252_v37, %v251_v36  ;;  %v253_v41 = vld [vmem:[#allocation8 + $0x70] sm:$0xff]  ;;  %v254_v42 = vld [vmem:[#allocation8 + $0x78] sm:$0xff]  ;;  %v89_v44 = vld [vmem:[#allocation7 + $0x30] sm:$0xff] }
  0x52   :  { %582 = vmatprep.subr.bf16.mxu0 %v581_v10  ;;  %v88_v43 = vld [vmem:[#allocation7 + $0x28] sm:$0xff]  ;;  %v621_v45 = vpack.c.bf16 %v254_v42, %v253_v41  ;;  %v90_v46 = vld [vmem:[#allocation7 + $0x38] sm:$0xff]  ;;  %v91_v47 = vld [vmem:[#allocation7 + $0x40] sm:$0xff] }
  0x53   :  { %600 = vmatpush3.bf16.msra.mxu1 %v597_v17  ;;  %v92_v48 = vld [vmem:[#allocation7 + $0x48] sm:$0xff] }
  0x54   :  { %602 = vmatprep.subr.bf16.mxu1 %v601_v23 }
  0x55   :  { %584 = vmatpush3.bf16.msra.mxu0 %v581_v10 }
  0x56   :  { %586 = vmatprep.subr.bf16.mxu0 %v585_v20 }
  0x57   :  { %604 = vmatpush3.bf16.msra.mxu1 %v601_v23 }
  0x58   :  { %606 = vmatprep.subr.bf16.mxu1 %v605_v27 }
  0x59   :  { %588 = vmatpush3.bf16.msra.mxu0 %v585_v20 }
  0x5a   :  { %590 = vmatprep.subr.bf16.mxu0 %v589_v26 }
  0x5b   :  { %608 = vmatpush3.bf16.msra.mxu1 %v605_v27 }
  0x5c   :  { %610 = vmatprep.subr.bf16.mxu1 %v609_v30 }
  0x5d   :  { %592 = vmatpush3.bf16.msra.mxu0 %v589_v26 }
  0x5f   :  { %612 = vmatpush3.bf16.msra.mxu1 %v609_v30 }
  0x60   :  { %512 = vmatmul.mubr.msk.f32.vlgmr.msra.gmra.mrb[0].mxu0 %vm93_vm0, %v84_v33  ;;  %614 = vmatprep.subr.bf16.mxu1 %v613_v35 }
  0x61   :  { %514 = vmatprep.mubr.msk.f32.mxu0 %vm93_vm0, %v85_v34 }
  0x63   :  { %616 = vmatpush3.bf16.msra.mxu1 %v613_v35 }
  0x64   :  { %515 = vmatmul.mubr.msk.f32.gmra.mrb[2].mxu0 %vm93_vm0, %v86_v38  ;;  %618 = vmatprep.subr.bf16.mxu1 %v617_v40 }
  0x65   :  { %517 = vmatprep.mubr.msk.f32.mxu0 %vm93_vm0, %v87_v39 }
  0x67   :  { %620 = vmatpush3.bf16.msra.mxu1 %v617_v40 }
  0x68   :  { %518 = vmatmul.mubr.msk.f32.gmra.mrb[4].mxu0 %vm93_vm0, %v88_v43  ;;  %622 = vmatprep.subr.bf16.mxu1 %v621_v45 }
  0x69   :  { %520 = vmatprep.mubr.msk.f32.mxu0 %vm93_vm0, %v89_v44 }
  0x6b   :  { %624 = vmatpush3.bf16.msra.mxu1 %v621_v45 }
  0x6c   :  { %521 = vmatmul.mubr.msk.f32.gmra.mrb[6].mxu0 %vm93_vm0, %v90_v46 }
  0x6d   :  { %523 = vmatprep.mubr.msk.f32.mxu0 %vm93_vm0, %v91_v47 }
  0x70   :  { %524 = vmatmul.mubr.msk.f32.gmra.mrb[8].mxu0 %vm93_vm0, %v92_v48 }
 0x133   :  { %v513_v49 = vpop.f32.mrb[0].mxu0 }
 0x134   :  { %v190_v50 = vpop.f32.mrb[1].mxu0 }
 0x135   :  { %558 = vmatprep.mubr.f32.mxu1 %v190_v50 }
 0x136   :  { %559 = vmatmul.mubr.f32.vlgmr.msra.gmra.mrb[0].mxu1 %v513_v49 }
 0x137   :  { %v516_v51 = vpop.f32.mrb[2].mxu0 }
 0x138   :  { %v200_v52 = vpop.f32.mrb[3].mxu0 }
 0x139   :  { %561 = vmatprep.mubr.f32.mxu1 %v200_v52 }
 0x13a   :  { %562 = vmatmul.mubr.f32.gmra.mrb[2].mxu1 %v516_v51 }
 0x13b   :  { %v519_v53 = vpop.f32.mrb[4].mxu0 }
 0x13c   :  { %v210_v54 = vpop.f32.mrb[5].mxu0 }
 0x13d   :  { %564 = vmatprep.mubr.f32.mxu1 %v210_v54 }
 0x13e   :  { %565 = vmatmul.mubr.f32.gmra.mrb[4].mxu1 %v519_v53 }
 0x13f   :  { %v522_v55 = vpop.f32.mrb[6].mxu0 }
 0x140   :  { %v220_v56 = vpop.f32.mrb[7].mxu0 }
 0x141   :  { %567 = vmatprep.mubr.f32.mxu1 %v220_v56 }
 0x142   :  { %568 = vmatmul.mubr.f32.gmra.mrb[6].mxu1 %v522_v55 }
 0x143   :  { %v525_v57 = vpop.f32.mrb[8].mxu0 }
 0x144   :  { %v230_v58 = vpop.f32.mrb[9].mxu0 }
 0x145   :  { %570 = vmatprep.mubr.f32.mxu1 %v230_v58 }
 0x146   :  { %571 = vmatmul.mubr.f32.gmra.mrb[8].mxu1 %v525_v57 }
 0x209   :  { %v560_v59 = vpop.f32.mrb[0].mxu1 }
 0x20a   :  { %v321_v60 = vpop.f32.mrb[1].mxu1  ;;  %v371_v62 = vmul.f32 %v560_v59, %v560_v59 }
 0x20b   :  { %v370_v2 = vmul.f32 %v321_v60, %v321_v60 }
 0x20d   :  { %v563_v61 = vpop.f32.mrb[2].mxu1 }
 0x20e   :  { %v373_v63 = vmul.f32 %v563_v61, %v563_v61  ;;  %v375_v0 = vmul.f32 %v563_v61, %v560_v59  ;;  %v331_v1 = vpop.f32.mrb[3].mxu1 }
 0x20f   :  { %v372_v3 = vmul.f32 %v331_v1, %v331_v1  ;;  %v374_v4 = vmul.f32 %v331_v1, %v321_v60 }
 0x210   :  { %v393_v5 = vadd.f32 %v373_v63, %v371_v62  ;;  %v383_v18 = vmul.f32 2.0, %v375_v0 }
 0x211   :  { %v392_v6 = vadd.f32 %v372_v3, %v370_v2  ;;  %v566_v7 = vpop.f32.mrb[4].mxu1  ;;  %v382_v23 = vmul.f32 2.0, %v374_v4 }
 0x212   :  { %v377_v8 = vsub.f32 %v566_v7, %v371_v62  ;;  %v341_v9 = vpop.f32.mrb[5].mxu1  ;;  %v395_v19 = vadd.f32 0.0001, %v393_v5  ;;  %v385_v31 = vadd.f32 0.0001, %v383_v18 }
 0x213   :  { %v376_v10 = vsub.f32 %v341_v9, %v370_v2  ;;  %v394_v24 = vadd.f32 0.0001, %v392_v6  ;;  %v384_v33 = vadd.f32 0.0001, %v382_v23 }
 0x215   :  { %v569_v11 = vpop.f32.mrb[6].mxu1 }
 0x216   :  { %v379_v12 = vsub.f32 %v569_v11, %v373_v63  ;;  %v351_v13 = vpop.f32.mrb[7].mxu1 }
 0x217   :  { %v378_v14 = vsub.f32 %v351_v13, %v372_v3 }
 0x218   :  { %v397_v15 = vadd.f32 %v379_v12, %v377_v8 }
 0x219   :  { %v396_v16 = vadd.f32 %v378_v14, %v376_v10  ;;  %v572_v17 = vpop.f32.mrb[8].mxu1 }
 0x21a   :  { %v399_v20 = vadd.f32 0.0009, %v397_v15  ;;  %v381_v21 = vsub.f32 %v572_v17, %v375_v0  ;;  %v361_v22 = vpop.f32.mrb[9].mxu1 }
 0x21b   :  { %v398_v25 = vadd.f32 0.0009, %v396_v16  ;;  %v380_v26 = vsub.f32 %v361_v22, %v374_v4 }
 0x21c   :  { %v401_v27 = vmul.f32 %v399_v20, %v395_v19  ;;  %v387_v28 = vmul.f32 2.0, %v381_v21 }
 0x21d   :  { %v400_v29 = vmul.f32 %v398_v25, %v394_v24  ;;  %v386_v30 = vmul.f32 2.0, %v380_v26 }
 0x21e   :  { %634 = vrcp.f32 %v401_v27  ;;  %v389_v32 = vadd.f32 0.0009, %v387_v28 }
 0x21f   :  { %636 = vrcp.f32 %v400_v29  ;;  %v388_v34 = vadd.f32 0.0009, %v386_v30 }
 0x220   :  { %v391_v35 = vmul.f32 %v389_v32, %v385_v31 }
 0x221   :  { %v390_v36 = vmul.f32 %v388_v34, %v384_v33 }
 0x228   :  { %v635_v37 = vpop.eup %634 }
 0x229   :  { %v637_v38 = vpop.eup %636  ;;  %v405_v39 = vmul.f32 %v635_v37, %v391_v35 }
 0x22a   :  { %v404_v40 = vmul.f32 %v637_v38, %v390_v36 }
 0x22c   :  { %v406_v41 = vadd.f32 %v405_v39, %v404_v40 }
 0x22e   :  { %407 = vadd.xlane.f32.xlu0 %v406_v41 }
 0x2bb   :  { %v408_v42 = vpop.xlane.xlu0 %407 }
 0x2bc   :  { %v409_v43 = vrot.slane %v408_v42, 4 }
 0x2be   :  { %v410_v44 = vadd.f32 %v409_v43, %v408_v42 }
 0x2c0   :  { %v411_v45 = vrot.slane %v410_v44, 2 }
 0x2c2   :  { %v412_v46 = vadd.f32 %v411_v45, %v410_v44 }
 0x2c4   :  { %v413_v47 = vrot.slane %v412_v46, 1 }
 0x2c6   :  { %v414_v48 = vadd.f32 %v413_v47, %v412_v46 }
 0x2c8   :  { %625 = vpush %v414_v48 }
 0x2f9   :  { %s626_s28 = spop %625 }
 0x2fa   :  { %v416_v49 = vstv %s626_s28 }
 0x2fb   :  { %417 = vst [vmem:[#allocation10] sm:$0xff] %v416_v49 }
 0x2fc   :  { %737 = shalt.err (!%p734_p8)
}
 0x2fd   :  { %s738_s14 = scalar_lea.hbm %s888_s4, 128 }
 0x2fe   :  { %p739_p9 = scmp.ne.s32.totalorder %s888_s4, %s738_s14  ;;  %p742_p10 = scmp.lt.u32.totalorder %s738_s14, %s888_s4 }
 0x300   :  { %p744_p11 = pnand %p742_p10, %p739_p9 }
 0x302   :  { %747 = shalt.err (!%p744_p11)
}
 0x303   :  { %427 = dma.vmem_to_hbm [thread:$0]  %s425_s27, 128, %s888_s4, [#allocation4]  }
 0x304   :  { %754 = dma.done.wait [#allocation4], 128  }
 0x305   :  { %755 = vsyncadd [#allocation4], 4294967168 }
 0x306   :  { %431 = vsyncpa [#allocation3], 1 }
 0x307   :  { %432 = vsyncpa [#allocation6], 1 }
 0x308   :  { %433 = vsyncpa [#allocation9], 1 }
 0x309   :  { %434 = vsyncpa [#allocation4], 1 }

</bundles_post_ra>
